<compile_context>
chip_gen: v6e
topology: v6e:2x2x1
jax: 0.10.0
libtpu: 0.0.40
codegen_flags: <defaults>
</compile_context>

<pallas_src>
import jax
import jax.numpy as jnp
from jax import lax
from jax.experimental import pallas as pl
from jax.experimental.pallas import tpu as pltpu


def _rnn_seq_kernel(ids_ref, h0_ref, efold_ref, whh_ref, wout_ref, bout_ref,
                    out_ref, h_ref):
    # ids_ref:   (T, B, 1) int32  -- all token ids, resident in VMEM
    # h0_ref:    (B, H)            -- initial hidden state (read at t == 0)
    # efold_ref: (V, H)            -- emb @ W_ih^T + (b_ih + b_hh)
    # whh_ref:   (H, H)            -- W_hh^T
    # wout_ref:  (H, W)            -- W_out^T zero-padded to lane-dense width W
    # bout_ref:  (1, W)            -- b_out zero-padded
    # out_ref:   (1, B, W) block   -- per-step logits slab (index varies with t)
    # h_ref:     (B, H)            -- hidden carry (same block every step -> resident)
    t = pl.program_id(0)

    @pl.when(t == 0)
    def _init():
        h_ref[...] = h0_ref[...]

    B, H = h_ref.shape
    V = efold_ref.shape[0]

    # In-kernel embedding "gather": one-hot built from an iota compare (VPU only).
    ids = ids_ref[t]                                            # (B, 1) int32
    cols = lax.broadcasted_iota(jnp.int32, (B, V), 1)
    one_hot = (ids == cols).astype(jnp.float32)                 # (B, V)

    # Two independent MXU matmuls (no concat on the critical path); RNN biases are
    # pre-folded into efold, so no bias add is needed here.
    x_pre = jnp.dot(one_hot, efold_ref[...],
                    preferred_element_type=jnp.float32)         # (B, H)
    h_pre = jnp.dot(h_ref[...], whh_ref[...],
                    preferred_element_type=jnp.float32)         # (B, H)
    h_new = jnp.tanh(x_pre + h_pre)                             # (B, H) f32

    h_ref[...] = h_new.astype(h_ref.dtype)                      # carry to next step

    # Output projection to the lane-dense padded width (unmasked store).
    out = jnp.dot(h_new, wout_ref[...],
                  preferred_element_type=jnp.float32) + bout_ref[...]
    out_ref[0] = out.astype(out_ref.dtype)


def rnn_forward_seq_pallas(token_seq, hidden, params):
    """Run the RNN over a whole token sequence inside one kernel.

    token_seq: (T, B) int32; hidden: (1, B, H) f32.
    Returns (out_seq (T, B, O), h_final (1, B, H)).
    """
    e_fold = params["e_fold"]            # (V, H)
    w_hh_t = params["w_hh_t"]            # (H, H)
    w_out_pad = params["w_out_t_pad"]    # (H, W)
    b_out_pad = params["b_out_pad"]      # (1, W)
    O = int(params["output_size"])

    T, B = token_seq.shape
    V, H = e_fold.shape
    W = w_out_pad.shape[1]

    ids3d = token_seq.reshape(T, B, 1).astype(jnp.int32)
    h0 = hidden[0]                       # (B, H)

    const2 = lambda t: (0, 0)
    flops = 2 * T * B * (V * H + H * H + H * W)
    bytes_accessed = 4 * (T * B + B * H + V * H + H * H + H * W + W
                          + T * B * W + B * H)

    out_pad, h_final = pl.pallas_call(
        _rnn_seq_kernel,
        grid_spec=pltpu.PrefetchScalarGridSpec(
            num_scalar_prefetch=0,
            grid=(T,),
            in_specs=[
                pl.BlockSpec((T, B, 1), lambda t: (0, 0, 0)),   # token ids (resident)
                pl.BlockSpec((B, H), const2),                   # initial hidden
                pl.BlockSpec((V, H), const2),                   # E_fold (resident)
                pl.BlockSpec((H, H), const2),                   # W_hh^T (resident)
                pl.BlockSpec((H, W), const2),                   # W_out^T padded (resident)
                pl.BlockSpec((1, W), const2),                   # b_out padded (resident)
            ],
            out_specs=[
                pl.BlockSpec((1, B, W), lambda t: (t, 0, 0)),   # per-step logits slab
                pl.BlockSpec((B, H), const2),                   # hidden carry / final h
            ],
        ),
        out_shape=[
            jax.ShapeDtypeStruct((T, B, W), jnp.float32),
            jax.ShapeDtypeStruct((B, H), jnp.float32),
        ],
        compiler_params=pltpu.CompilerParams(
            dimension_semantics=("arbitrary",)),                # recurrent time axis
        cost_estimate=pl.CostEstimate(
            flops=flops, transcendentals=T * B * H, bytes_accessed=bytes_accessed),
    )(ids3d, h0, e_fold, w_hh_t, w_out_pad, b_out_pad)

    return out_pad[:, :, :O], h_final[None, :, :]


def rnn_forward_pallas(input_ids, hidden, params):
    """Matches RNN.forward: input_ids (B,), hidden (1,B,H) -> output (1,B,O), hidden (1,B,H)."""
    out_seq, h_new = rnn_forward_seq_pallas(input_ids[None, :], hidden, params)
    return out_seq, h_new  # out_seq is (1, B, O) since T == 1


def init_params(key, input_size, hidden_size, output_size):
    ks = jax.random.split(key, 7)
    scale = 1.0 / jnp.sqrt(hidden_size)
    V, H, O = input_size, hidden_size, output_size

    # Raw (PyTorch-equivalent) parameters, kept for the reference path.
    embedding = jax.random.normal(ks[0], (V, H), jnp.float32)                # Embedding: N(0,1)
    w_ih_t = jax.random.uniform(ks[1], (H, H), jnp.float32, -scale, scale)   # (in, out) layout
    w_hh_t = jax.random.uniform(ks[2], (H, H), jnp.float32, -scale, scale)
    b_ih = jax.random.uniform(ks[3], (1, H), jnp.float32, -scale, scale)
    b_hh = jax.random.uniform(ks[4], (1, H), jnp.float32, -scale, scale)
    w_out_t = jax.random.uniform(ks[5], (H, O), jnp.float32, -scale, scale)
    b_out = jax.random.uniform(ks[6], (1, O), jnp.float32, -scale, scale)

    # One-time init-side transforms consumed by the fused kernel.
    # Embedding folded through W_ih (+ both RNN biases): one_hot @ e_fold
    #   == emb[id] @ W_ih^T + b_ih + b_hh   (each one-hot row has exactly one 1).
    e_fold = embedding @ w_ih_t + (b_ih + b_hh)                              # (V, H)
    W_pad = max(128, ((O + 127) // 128) * 128)                               # lane-dense width
    w_out_t_pad = jnp.zeros((H, W_pad), jnp.float32).at[:, :O].set(w_out_t)
    b_out_pad = jnp.zeros((1, W_pad), jnp.float32).at[:, :O].set(b_out)

    return {
        "embedding": embedding,
        "w_ih_t": w_ih_t, "w_hh_t": w_hh_t, "b_ih": b_ih, "b_hh": b_hh,
        "w_out_t": w_out_t, "b_out": b_out,
        # fused / padded forms consumed by the Pallas kernel
        "e_fold": e_fold,
        "w_out_t_pad": w_out_t_pad,
        "b_out_pad": b_out_pad,
        "output_size": O,
    }


# ----------------------------- pure-JAX reference -----------------------------

def _reference_step(ids, h, params):
    x = jnp.take(params["embedding"], ids, axis=0)
    h_new = jnp.tanh(x @ params["w_ih_t"] + params["b_ih"]
                     + h @ params["w_hh_t"] + params["b_hh"])
    out = h_new @ params["w_out_t"] + params["b_out"]
    return out, h_new


def reference_forward(input_ids, hidden, params):
    """Single-step reference matching PyTorch forward() for n_layers=1, model_type='rnn'."""
    out, h_new = _reference_step(input_ids, hidden[0], params)
    return out[None], h_new[None]


def reference_forward_seq(token_seq, hidden, params):
    def step(h, ids):
        out, h_new = _reference_step(ids, h, params)
        return h_new, out
    h_final, outs = lax.scan(step, hidden[0], token_seq)
    return outs, h_final[None]


if __name__ == "__main__":
    input_size = 20    # vocabulary size
    hidden_size = 32
    output_size = 16
    batch_size = 8
    seq_len = 8
    n_layers = 1

    key = jax.random.PRNGKey(0)
    k_param, k_in = jax.random.split(key)
    params = init_params(k_param, input_size, hidden_size, output_size)

    token_seq = jax.random.randint(k_in, (seq_len, batch_size), 0, input_size,
                                   dtype=jnp.int32)
    hidden0 = jnp.zeros((n_layers, batch_size, hidden_size), jnp.float32)  # init_hidden

    # --- single-step call: exact semantics of the PyTorch forward() (T == 1) ---
    out1, h1 = rnn_forward_pallas(token_seq[0], hidden0, params)
    out1 = jax.block_until_ready(out1)
    h1 = jax.block_until_ready(h1)
    ref_out1, ref_h1 = reference_forward(token_seq[0], hidden0, params)
    assert out1.shape == (1, batch_size, output_size)
    assert h1.shape == (n_layers, batch_size, hidden_size)
    # Tolerances allow for TPU default (reduced-precision) matmul passes and the
    # bias/embedding fold changing accumulation order.
    assert jnp.allclose(out1, ref_out1, atol=1e-4, rtol=1e-4)
    assert jnp.allclose(h1, ref_h1, atol=1e-4, rtol=1e-4)

    # --- full-sequence call: per-token loop amortized inside the kernel ---
    out_seq, h_final = rnn_forward_seq_pallas(token_seq, hidden0, params)
    out_seq = jax.block_until_ready(out_seq)
    h_final = jax.block_until_ready(h_final)
    ref_out_seq, ref_h_final = reference_forward_seq(token_seq, hidden0, params)
    assert out_seq.shape == (seq_len, batch_size, output_size)
    assert h_final.shape == (n_layers, batch_size, hidden_size)
    # Slightly looser tolerance: rounding differences compound over the 8-step recurrence.
    assert jnp.allclose(out_seq, ref_out_seq, atol=1e-3, rtol=1e-3)
    assert jnp.allclose(h_final, ref_h_final, atol=1e-3, rtol=1e-3)

    print("KERNEL_OK")
</pallas_src>

<mosaic_0001>
module attributes {stable_mosaic.version = 11 : i64} {
  func.func @_rnn_seq_kernel(%arg0: i32, %arg1: memref<1x8x1xi32, #tpu.memory_space<vmem>>, %arg2: memref<8x32xf32, #tpu.memory_space<vmem>>, %arg3: memref<20x32xf32, #tpu.memory_space<vmem>>, %arg4: memref<32x32xf32, #tpu.memory_space<vmem>>, %arg5: memref<32x128xf32, #tpu.memory_space<vmem>>, %arg6: memref<1x128xf32, #tpu.memory_space<vmem>>, %arg7: memref<1x8x128xf32, #tpu.memory_space<vmem>>, %arg8: memref<8x32xf32, #tpu.memory_space<vmem>>) attributes {dimension_semantics = [#tpu.dimension_semantics<arbitrary>], iteration_bounds = array<i64: 1>, scalar_prefetch = 0 : i64, scratch_operands = 0 : i64, tpu.core_type = #tpu.core_type<tc>, window_params = [{pipeline_mode = #tpu.pipeline_mode<synchronous>, transform_indices = @transform_0, window_bounds = array<i64: 1, 8, 1>}, {pipeline_mode = #tpu.pipeline_mode<synchronous>, transform_indices = @transform_1, window_bounds = array<i64: 8, 32>}, {pipeline_mode = #tpu.pipeline_mode<synchronous>, transform_indices = @transform_2, window_bounds = array<i64: 20, 32>}, {pipeline_mode = #tpu.pipeline_mode<synchronous>, transform_indices = @transform_3, window_bounds = array<i64: 32, 32>}, {pipeline_mode = #tpu.pipeline_mode<synchronous>, transform_indices = @transform_4, window_bounds = array<i64: 32, 128>}, {pipeline_mode = #tpu.pipeline_mode<synchronous>, transform_indices = @transform_5, window_bounds = array<i64: 1, 128>}, {transform_indices = @transform_6, window_bounds = array<i64: 1, 8, 128>}, {pipeline_mode = #tpu.pipeline_mode<synchronous>, transform_indices = @transform_7, window_bounds = array<i64: 8, 32>}]} {
    %c0_i32 = arith.constant 0 : i32
    %0 = arith.cmpi eq, %arg0, %c0_i32 : i32
    %1 = arith.extui %0 : i1 to i32
    %c0_i32_0 = arith.constant 0 : i32
    %2 = arith.cmpi ne, %1, %c0_i32_0 : i32
    scf.if %2 {
      %c0_19 = arith.constant 0 : index
      %c0_20 = arith.constant 0 : index
      %27 = vector.load %arg2[%c0_19, %c0_20] : memref<8x32xf32, #tpu.memory_space<vmem>>, vector<8x32xf32>
      %c0_21 = arith.constant 0 : index
      %c0_22 = arith.constant 0 : index
      %28 = vector.load %arg8[%c0_21, %c0_22] : memref<8x32xf32, #tpu.memory_space<vmem>>, vector<8x32xf32>
      tpu.vector_store %arg8[%c0_21, %c0_22], %27 {strides = array<i32>} : memref<8x32xf32, #tpu.memory_space<vmem>>, vector<8x32xf32>,
    } else {
    }
    %3 = arith.index_cast %arg0 : i32 to index
    %c0 = arith.constant 0 : index
    %c0_1 = arith.constant 0 : index
    %4 = vector.load %arg1[%3, %c0, %c0_1] : memref<1x8x1xi32, #tpu.memory_space<vmem>>, vector<1x8x1xi32>
    %5 = vector.shape_cast %4 : vector<1x8x1xi32> to vector<8x1xi32>
    %6 = tpu.iota {dimensions = array<i32: 1>} : vector<8x20xi32>
    %7 = vector.broadcast %5 : vector<8x1xi32> to vector<8x20xi32>
    %8 = arith.cmpi eq, %7, %6 : vector<8x20xi32>
    %9 = arith.extui %8 : vector<8x20xi1> to vector<8x20xi32>
    %10 = arith.sitofp %9 : vector<8x20xi32> to vector<8x20xf32>
    %c0_2 = arith.constant 0 : index
    %c0_3 = arith.constant 0 : index
    %11 = vector.load %arg3[%c0_2, %c0_3] : memref<20x32xf32, #tpu.memory_space<vmem>>, vector<20x32xf32>
    %cst = arith.constant dense<0.000000e+00> : vector<8x32xf32>
    %12 = tpu.matmul %10, %11, %cst {dimension_numbers = #tpu.dot_dimension_numbers<[1], [0], [0], [1], [0, 0, 1, 1], [], []>} : vector<8x20xf32>, vector<20x32xf32>, vector<8x32xf32> -> vector<8x32xf32>
    %c0_4 = arith.constant 0 : index
    %c0_5 = arith.constant 0 : index
    %13 = vector.load %arg8[%c0_4, %c0_5] : memref<8x32xf32, #tpu.memory_space<vmem>>, vector<8x32xf32>
    %c0_6 = arith.constant 0 : index
    %c0_7 = arith.constant 0 : index
    %14 = vector.load %arg4[%c0_6, %c0_7] : memref<32x32xf32, #tpu.memory_space<vmem>>, vector<32x32xf32>
    %cst_8 = arith.constant dense<0.000000e+00> : vector<8x32xf32>
    %15 = tpu.matmul %13, %14, %cst_8 {dimension_numbers = #tpu.dot_dimension_numbers<[1], [0], [0], [1], [0, 0, 1, 1], [], []>} : vector<8x32xf32>, vector<32x32xf32>, vector<8x32xf32> -> vector<8x32xf32>
    %16 = arith.addf %12, %15 : vector<8x32xf32>
    %17 = math.tanh %16 : vector<8x32xf32>
    %c0_9 = arith.constant 0 : index
    %c0_10 = arith.constant 0 : index
    %18 = vector.load %arg8[%c0_9, %c0_10] : memref<8x32xf32, #tpu.memory_space<vmem>>, vector<8x32xf32>
    tpu.vector_store %arg8[%c0_9, %c0_10], %17 {strides = array<i32>} : memref<8x32xf32, #tpu.memory_space<vmem>>, vector<8x32xf32>,
    %c0_11 = arith.constant 0 : index
    %c0_12 = arith.constant 0 : index
    %19 = vector.load %arg5[%c0_11, %c0_12] : memref<32x128xf32, #tpu.memory_space<vmem>>, vector<32x128xf32>
    %cst_13 = arith.constant dense<0.000000e+00> : vector<8x128xf32>
    %20 = tpu.matmul %17, %19, %cst_13 {dimension_numbers = #tpu.dot_dimension_numbers<[1], [0], [0], [1], [0, 0, 1, 1], [], []>} : vector<8x32xf32>, vector<32x128xf32>, vector<8x128xf32> -> vector<8x128xf32>
    %c0_14 = arith.constant 0 : index
    %c0_15 = arith.constant 0 : index
    %21 = vector.load %arg6[%c0_14, %c0_15] : memref<1x128xf32, #tpu.memory_space<vmem>>, vector<1x128xf32>
    %22 = vector.broadcast %21 : vector<1x128xf32> to vector<8x128xf32>
    %23 = arith.addf %20, %22 : vector<8x128xf32>
    %c0_16 = arith.constant 0 : index
    %c0_17 = arith.constant 0 : index
    %c0_18 = arith.constant 0 : index
    %24 = vector.load %arg7[%c0_16, %c0_17, %c0_18] : memref<1x8x128xf32, #tpu.memory_space<vmem>>, vector<1x8x128xf32>
    %25 = vector.shape_cast %24 : vector<1x8x128xf32> to vector<8x128xf32>
    %26 = vector.shape_cast %23 : vector<8x128xf32> to vector<1x8x128xf32>
    tpu.vector_store %arg7[%c0_16, %c0_17, %c0_18], %26 {strides = array<i32>} : memref<1x8x128xf32, #tpu.memory_space<vmem>>, vector<1x8x128xf32>,
    return
  }
  func.func @transform_0(%arg0: i32) -> (i32, i32, i32) {
    %c0_i32 = arith.constant 0 : i32
    %c0_i32_0 = arith.constant 0 : i32
    %c0_i32_1 = arith.constant 0 : i32
    %c0_i32_2 = arith.constant 0 : i32
    return %c0_i32, %c0_i32_0, %c0_i32_1 : i32, i32, i32
  }
  func.func @transform_1(%arg0: i32) -> (i32, i32) {
    %c0_i32 = arith.constant 0 : i32
    %c0_i32_0 = arith.constant 0 : i32
    %c0_i32_1 = arith.constant 0 : i32
    return %c0_i32, %c0_i32_0 : i32, i32
  }
  func.func @transform_2(%arg0: i32) -> (i32, i32) {
    %c0_i32 = arith.constant 0 : i32
    %c0_i32_0 = arith.constant 0 : i32
    %c0_i32_1 = arith.constant 0 : i32
    return %c0_i32, %c0_i32_0 : i32, i32
  }
  func.func @transform_3(%arg0: i32) -> (i32, i32) {
    %c0_i32 = arith.constant 0 : i32
    %c0_i32_0 = arith.constant 0 : i32
    %c0_i32_1 = arith.constant 0 : i32
    return %c0_i32, %c0_i32_0 : i32, i32
  }
  func.func @transform_4(%arg0: i32) -> (i32, i32) {
    %c0_i32 = arith.constant 0 : i32
    %c0_i32_0 = arith.constant 0 : i32
    %c0_i32_1 = arith.constant 0 : i32
    return %c0_i32, %c0_i32_0 : i32, i32
  }
  func.func @transform_5(%arg0: i32) -> (i32, i32) {
    %c0_i32 = arith.constant 0 : i32
    %c0_i32_0 = arith.constant 0 : i32
    %c0_i32_1 = arith.constant 0 : i32
    return %c0_i32, %c0_i32_0 : i32, i32
  }
  func.func @transform_6(%arg0: i32) -> (i32, i32, i32) {
    %c0_i32 = arith.constant 0 : i32
    %c0_i32_0 = arith.constant 0 : i32
    %c0_i32_1 = arith.constant 0 : i32
    return %arg0, %c0_i32, %c0_i32_0 : i32, i32, i32
  }
  func.func @transform_7(%arg0: i32) -> (i32, i32) {
    %c0_i32 = arith.constant 0 : i32
    %c0_i32_0 = arith.constant 0 : i32
    %c0_i32_1 = arith.constant 0 : i32
    return %c0_i32, %c0_i32_0 : i32, i32
  }
}

</mosaic_0001>

<bundles_post_ra>
// kernel: tpu_custom_call.1
= control target key start
LH: loop header
LB: loop body
LE: loop exit
PB: predicated region body
PF: predicated region fallthrough
CT: control target
= control target key end

     0   :  { %13 = vsyncpa [#allocation3], 0  ;;  %s616_s0 = inlined_call_operand.vmem [shape: s32[1,8,1], index: 0, kind: input, shape index: {}]   ;;  %s617_s1 = inlined_call_operand.vmem [shape: f32[8,32], index: 1, kind: input, shape index: {}]   ;;  %s618_s2 = inlined_call_operand.hbm [shape: f32[20,32], index: 2, kind: input, shape index: {}]   ;;  %s619_s3 = inlined_call_operand.hbm [shape: f32[32,32], index: 3, kind: input, shape index: {}]   ;;  %s620_s4 = inlined_call_operand.hbm [shape: f32[32,128], index: 4, kind: input, shape index: {}]   ;;  %s621_s5 = inlined_call_operand.vmem [shape: f32[1,128], index: 5, kind: input, shape index: {}]   ;;  %s622_s6 = inlined_call_operand.hbm [shape: f32[1,8,128], index: 6, kind: output, shape index: {0}]   ;;  %s623_s7 = inlined_call_operand.hbm [shape: f32[8,32], index: 7, kind: output, shape index: {1}]  }
   0x1   :  { %14 = vsyncpa [#allocation6], 0 }
   0x2   :  { %15 = vsyncpa [#allocation4], 0 }
   0x3   :  { %16 = vsyncpa [#allocation10], 0  ;;  %s535_s24 = smov [#allocation5]   ;;  %s536_s26 = smov [#allocation2]  }
   0x4   :  { %s38_s25 = sshll.u32 %s535_s24, 4  ;;  %s26_s27 = sshll.u32 %s536_s26, 4  ;;  %s39_s25 = int_to_ptr.vmem [resolvable:$true] %s38_s25  ;;  %s27_s27 = int_to_ptr.vmem [resolvable:$true] %s26_s27 }
   0x5   :  { %s435_s28 = scalar_lea.vmem %s39_s25, 512  ;;  %p440_p1 = scmp.lt.s32.totalorder %s39_s25, %s39_s25 }
   0x6   :  { %p436_p0 = scmp.ne.s32.totalorder %s39_s25, %s435_s28  ;;  %p441_p2 = scmp.lt.s32.totalorder %s435_s28, %s435_s28 }
   0x8   :  { %p442_p3 = por %p441_p2, %p440_p1 }
   0xa   :  { %p443_p4 = pnand %p442_p3, %p436_p0 }
   0xc   :  { %446 = shalt.err (!%p443_p4)
}
   0xd   :  { %s537_s29 = smov 128   ;;  %s538_s30 = smov 8  }
   0xe   :  { %44 = dma.hbm_to_vmem [thread:$0]  %s619_s3, 512, %s39_s25, [#allocation6], %s537_s29, %s537_s29, %s538_s30  }
   0xf   :  { %s455_s10 = scalar_lea.vmem %s27_s27, 384  ;;  %p460_p6 = scmp.lt.s32.totalorder %s27_s27, %s27_s27 }
  0x10   :  { %p456_p5 = scmp.ne.s32.totalorder %s27_s27, %s455_s10  ;;  %p461_p7 = scmp.lt.s32.totalorder %s455_s10, %s455_s10 }
  0x12   :  { %p462_p8 = por %p461_p7, %p460_p6 }
  0x14   :  { %p463_p9 = pnand %p462_p8, %p456_p5 }
  0x16   :  { %466 = shalt.err (!%p463_p9)
}
  0x17   :  { %32 = dma.hbm_to_vmem [thread:$0]  %s618_s2, 384, %s27_s27, [#allocation3], %s537_s29, %s537_s29, %s538_s30  }
  0x18   :  { %s539_s13 = smov [#allocation7]  }
  0x19   :  { %s50_s14 = sshll.u32 %s539_s13, 4  ;;  %s51_s14 = int_to_ptr.vmem [resolvable:$true] %s50_s14 }
  0x1a   :  { %s475_s15 = scalar_lea.vmem %s51_s14, 512  ;;  %p480_p11 = scmp.lt.s32.totalorder %s51_s14, %s51_s14 }
  0x1b   :  { %p476_p10 = scmp.ne.s32.totalorder %s51_s14, %s475_s15  ;;  %p481_p12 = scmp.lt.s32.totalorder %s475_s15, %s475_s15 }
  0x1d   :  { %p482_p13 = por %p481_p12, %p480_p11 }
  0x1f   :  { %p483_p0 = pnand %p482_p13, %p476_p10 }
  0x21   :  { %486 = shalt.err (!%p483_p0)
}
  0x22   :  { %56 = dma.hbm_to_vmem [thread:$0]  %s620_s4, 512, %s51_s14, [#allocation6], %s537_s29, %s537_s29, %s538_s30  }
  0x23   :  { %527 = dma.done.wait [#allocation3], 384  }
  0x24   :  { %528 = vsyncadd [#allocation3], 4294966912 }
  0x25   :  { %529 = dma.done.wait [#allocation6], 1024  }
  0x26   :  { %530 = vsyncadd [#allocation6], 4294966272  ;;  %v540_v0 = vmov 0   ;;  %v541_v1 = vmov 0.0   ;;  %vm542_vm0 = vmmov 0   ;;  %vm172_vm1 = vcmask 1043456  }
  0x27   :  { %424 = vset.pattern.permute.xlu0 %v540_v0  ;;  %383 = vmatprep.subr.mxu0 %v541_v1  ;;  %v77_v2 = vld [vmem:[%s616_s0] sm:$0xff]  ;;  %v93_v3 = vld [vmem:[#allocation5 + $0x18] sm:$0xff]  ;;  %v92_v4 = vld [vmem:[#allocation5 + $0x10] sm:$0xff]  ;;  %vm73_vm2 = vcmask 261120   ;;  %v78_v12 = vlaneseq  ;;  %vm168_vm3 = vcmask 162816   ;;  %s543_s0 = smov [#allocation9]  }
  0x28   :  { %394 = vmatprep.subr.mxu1 %v541_v1  ;;  %391 = vmatprep.mubr.msk.f32.mxu0 %vm542_vm0, %v541_v1  ;;  %v88_v5 = vld [vmem:[#allocation2 + $0x10] sm:$0xf]  ;;  %v91_v6 = vld [vmem:[#allocation5 + $0x8] sm:$0xff]  ;;  %v87_v7 = vld [vmem:[#allocation2 + $0x8] sm:$0xff] }
  0x29   :  { %400 = vmatprep.mubr.msk.f32.mxu1 %vm542_vm0, %v541_v1  ;;  %81 = vperm.xlu0 %424, %v77_v2   ;;  %v72_v8 = vld [vmem:[%s617_s1] sm:$0xff]  ;;  %v90_v10 = vld [vmem:[#allocation5] sm:$0xff]  ;;  %v79_v13 = vand.u32 127, %v78_v12  ;;  %v251_v16 = vld [vmem:[#allocation7 + $0x18] sm:$0xff]  ;;  %s349_s1 = sshll.u32 %s543_s0, 4  ;;  %s350_s1 = int_to_ptr.vmem [resolvable:$true] %s349_s1 }
  0x2a   :  { %384 = vmatpush3.msra.mxu0 %v93_v3  ;;  %395 = vmatpush3.msk.msra.mxu1 %vm172_vm1, %v88_v5  ;;  %74 = vst.msk [vmem:[#allocation9] sm:$0xff] %vm73_vm2, %v72_v8  ;;  %v86_v9 = vld [vmem:[#allocation2] sm:$0xff]  ;;  %v250_v17 = vld [vmem:[#allocation7 + $0x10] sm:$0xff]  ;;  %v248_v21 = vld [vmem:[#allocation7] sm:$0xff]  ;;  %s487_s19 = scalar_lea.vmem %s350_s1, 128  ;;  %p492_p2 = scmp.lt.s32.totalorder %s350_s1, %s350_s1 }
  0x2b   :  { %385 = vmatprep.subr.mxu0 %v541_v1  ;;  %396 = vmatprep.subr.mxu1 %v541_v1  ;;  %v249_v19 = vld [vmem:[#allocation7 + $0x8] sm:$0xff]  ;;  %p488_p1 = scmp.ne.s32.totalorder %s350_s1, %s487_s19  ;;  %p493_p3 = scmp.lt.s32.totalorder %s487_s19, %s487_s19 }
  0x2c   :  { %386 = vmatpush3.msra.mxu0 %v92_v4  ;;  %397 = vmatpush3.msra.mxu1 %v87_v7 }
  0x2d   :  { %387 = vmatprep.subr.mxu0 %v541_v1  ;;  %398 = vmatprep.subr.mxu1 %v541_v1  ;;  %p494_p4 = por %p493_p3, %p492_p2 }
  0x2e   :  { %388 = vmatpush3.msra.mxu0 %v91_v6  ;;  %399 = vmatpush3.msra.mxu1 %v86_v9 }
  0x2f   :  { %389 = vmatprep.subr.mxu0 %v541_v1  ;;  %403 = vmatprep.subr.mxu1 %v541_v1  ;;  %p495_p5 = pnand %p494_p4, %p488_p1 }
  0x30   :  { %390 = vmatpush3.msra.mxu0 %v90_v10 }
  0x31   :  { %v89_v11 = vld [vmem:[#allocation9] sm:$0xff] }
  0x32   :  { %392 = vmatmul.mubr.msk.f32.vlgmr.msra.gmra.mxu0 %vm73_vm2, %v89_v11 }
  0xa4   :  { %v82_v14 = vpop.permute.xlu0 %81 }
  0xa5   :  { %vm83_vm4 = vcmp.eq.s32.totalorder %v82_v14, %v79_v13 }
  0xa6   :  { %v363_v15 = vsel %vm83_vm4, 1.0, %v541_v1 }
  0xa7   :  { %401 = vmatmul.mubr.msk.f32.vlgmr.msra.gmra.mxu1 %vm168_vm3, %v363_v15 }
  0xa8   :  { %411 = vmatprep.mubr.msk.f32.mxu1 %vm542_vm0, %v541_v1  ;;  %404 = vmatpush3.msra.mxu1 %v251_v16 }
  0xa9   :  { %405 = vmatprep.subr.mxu1 %v541_v1 }
  0xaa   :  { %406 = vmatpush3.msra.mxu1 %v250_v17 }
  0xab   :  { %407 = vmatprep.subr.mxu1 %v541_v1 }
  0xac   :  { %408 = vmatpush3.msra.mxu1 %v249_v19 }
  0xad   :  { %409 = vmatprep.subr.mxu1 %v541_v1 }
  0xae   :  { %410 = vmatpush3.msra.mxu1 %v248_v21 }
  0xf2   :  { %v164_v18 = vpop.f32.mrf.mxu0 }
  0xf4   :  { %v393_v20 = vpop.f32.mrf.mxu0 }
 0x167   :  { %v242_v22 = vpop.f32.mrf.mxu1 }
 0x168   :  { %v243_v23 = vadd.f32 %v242_v22, %v164_v18 }
 0x169   :  { %v402_v24 = vpop.f32.mrf.mxu1 }
 0x16a   :  { %425 = vtanh.f32 %v243_v23 }
 0x177   :  { %v426_v25 = vpop.eup %425 }
 0x178   :  { %247 = vst.msk [vmem:[#allocation9] sm:$0xff] %vm73_vm2, %v426_v25  ;;  %412 = vmatmul.mubr.msk.f32.vlgmr.msra.gmra.mxu1 %vm73_vm2, %v426_v25 }
 0x179   :  { %498 = shalt.err (!%p495_p5)
}
 0x17a   :  { %352 = dma.vmem_to_hbm [thread:$0]  %s350_s1, 128, %s623_s7, [#allocation10]   ;;  %v367_v26 = vld [vmem:[%s621_s5] ss:$0 sm:$0xff] }
 0x17b   :  { %s544_s24 = smov [#allocation8]  }
 0x17c   :  { %s339_s25 = sshll.u32 %s544_s24, 4  ;;  %s340_s25 = int_to_ptr.vmem [resolvable:$true] %s339_s25 }
 0x17d   :  { %s507_s26 = scalar_lea.vmem %s340_s25, 128  ;;  %p512_p7 = scmp.lt.s32.totalorder %s340_s25, %s340_s25 }
 0x17e   :  { %p508_p6 = scmp.ne.s32.totalorder %s340_s25, %s507_s26  ;;  %p513_p8 = scmp.lt.s32.totalorder %s507_s26, %s507_s26 }
 0x180   :  { %p514_p9 = por %p513_p8, %p512_p7 }
 0x182   :  { %p515_p10 = pnand %p514_p9, %p508_p6 }
 0x238   :  { %v328_v27 = vpop.f32.mrf.mxu1 }
 0x239   :  { %v329_v28 = vadd.f32 %v367_v26, %v328_v27 }
 0x23a   :  { %v413_v29 = vpop.f32.mrf.mxu1 }
 0x23b   :  { %332 = vst [vmem:[#allocation8] sm:$0xff] %v329_v28 }
 0x23c   :  { %518 = shalt.err (!%p515_p10)
}
 0x23d   :  { %342 = dma.vmem_to_hbm [thread:$0]  %s340_s25, 128, %s622_s6, [#allocation4]  }
 0x23e   :  { %531 = dma.done.wait [#allocation4], 128  }
 0x23f   :  { %532 = vsyncadd [#allocation4], 4294967168 }
 0x240   :  { %533 = dma.done.wait [#allocation10], 128  }
 0x241   :  { %534 = vsyncadd [#allocation10], 4294967168 }
 0x242   :  { %359 = vsyncpa [#allocation3], 1 }
 0x243   :  { %360 = vsyncpa [#allocation6], 1 }
 0x244   :  { %361 = vsyncpa [#allocation4], 1 }
 0x245   :  { %362 = vsyncpa [#allocation10], 1 }

</bundles_post_ra>
